<compile_context>
chip_gen: v6e
topology: v6e:2x2x1
jax: 0.10.0
libtpu: 0.0.40
codegen_flags: <defaults>
</compile_context>

<pallas_src>
import jax
import jax.numpy as jnp
from jax.experimental import pallas as pl
from jax.experimental.pallas import tpu as pltpu


def _round_up(x, m):
    return (x + m - 1) // m * m


def decoder_kernel(x_ref, w1_ref, b1_ref, w2_ref, b2_ref, o_ref):
    # First linear: [TB, z] (bf16) @ [z, Hp] (bf16) -> f32 accumulation.
    h = jnp.dot(x_ref[...], w1_ref[...], preferred_element_type=jnp.float32)
    h = jnp.maximum(h + b1_ref[...], 0.0)                      # ReLU (VPU)
    # Second linear: [TB, Hp] @ [Hp, Op] -> f32 accumulation.
    logits = jnp.dot(h.astype(w2_ref.dtype), w2_ref[...],
                     preferred_element_type=jnp.float32)
    logits = logits + b2_ref[...]
    # Sigmoid: exp + reciprocal both on the EUP (approx recip frees VALU).
    o_ref[...] = pl.reciprocal(1.0 + jnp.exp(-logits),
                               approx=True).astype(o_ref.dtype)


def decoder_forward(z, w1, b1, w2, b2, *, batch_tile=128):
    """z: [B, z_dim] f32; weights stored [in_features, out_features] (f32).

    Returns mean: [B, out_dim] f32.
    """
    B, z_dim = z.shape
    hidden_dim = w1.shape[1]
    out_dim = w2.shape[1]

    # Lane-dense padded sizes (multiples of 128 on the feature axes).
    Hp = _round_up(hidden_dim, 128)      # 500 -> 512
    Op = _round_up(out_dim, 128)         # 784 -> 896

    # Zero-pad weights / biases; cast MXU operands to bf16 (biases stay f32,
    # added after f32 accumulation).
    w1p = jnp.zeros((z_dim, Hp), jnp.bfloat16).at[:, :hidden_dim].set(
        w1.astype(jnp.bfloat16))
    b1p = jnp.zeros((1, Hp), jnp.float32).at[:, :hidden_dim].set(
        b1.reshape(1, -1).astype(jnp.float32))
    w2p = jnp.zeros((Hp, Op), jnp.bfloat16).at[:hidden_dim, :out_dim].set(
        w2.astype(jnp.bfloat16))
    b2p = jnp.zeros((1, Op), jnp.float32).at[:, :out_dim].set(
        b2.reshape(1, -1).astype(jnp.float32))

    zb = z.astype(jnp.bfloat16)

    # Batch tiling: pad B to a multiple of the tile; modest tile keeps
    # VMEM use tiny (safe even against v7x's 64 MiB / 32 MiB scoped default).
    TB = min(batch_tile, _round_up(B, 8))
    Bp = _round_up(B, TB)
    if Bp != B:
        zb = jnp.zeros((Bp, z_dim), jnp.bfloat16).at[:B].set(zb)

    cost = pl.CostEstimate(
        flops=2 * Bp * (z_dim * Hp + Hp * Op),
        transcendentals=Bp * Op,
        bytes_accessed=(zb.size * 2 + w1p.size * 2 + w2p.size * 2
                        + b1p.size * 4 + b2p.size * 4 + Bp * Op * 4),
    )

    num_tiles = Bp // TB
    if num_tiles == 1:
        # Single tile: no grid -> no pipeline prologue/epilogue overhead.
        out = pl.pallas_call(
            decoder_kernel,
            out_shape=jax.ShapeDtypeStruct((Bp, Op), jnp.float32),
            in_specs=[pl.BlockSpec(memory_space=pltpu.MemorySpace.VMEM)] * 5,
            out_specs=pl.BlockSpec(memory_space=pltpu.MemorySpace.VMEM),
            cost_estimate=cost,
        )(zb, w1p, b1p, w2p, b2p)
    else:
        # Batch-tiled grid; weights use constant block indices so they stay
        # VMEM-resident across tiles. "parallel" lets v7x split across 2 TCs.
        out = pl.pallas_call(
            decoder_kernel,
            out_shape=jax.ShapeDtypeStruct((Bp, Op), jnp.float32),
            grid=(num_tiles,),
            in_specs=[
                pl.BlockSpec((TB, z_dim), lambda i: (i, 0)),
                pl.BlockSpec((z_dim, Hp), lambda i: (0, 0)),
                pl.BlockSpec((1, Hp), lambda i: (0, 0)),
                pl.BlockSpec((Hp, Op), lambda i: (0, 0)),
                pl.BlockSpec((1, Op), lambda i: (0, 0)),
            ],
            out_specs=pl.BlockSpec((TB, Op), lambda i: (i, 0)),
            compiler_params=pltpu.CompilerParams(
                dimension_semantics=("parallel",)),
            cost_estimate=cost,
        )(zb, w1p, b1p, w2p, b2p)

    # Slice off batch and output-lane padding.
    return out[:B, :out_dim]


def init_decoder_params(key, z_dim=20, hidden_dim=500, out_dim=28 * 28):
    """PyTorch nn.Linear-style init; weights stored [in_features, out_features]."""
    k1, k2, k3, k4 = jax.random.split(key, 4)
    bound1 = 1.0 / jnp.sqrt(z_dim)
    bound2 = 1.0 / jnp.sqrt(hidden_dim)
    w1 = jax.random.uniform(k1, (z_dim, hidden_dim), jnp.float32, -bound1, bound1)
    b1 = jax.random.uniform(k2, (hidden_dim,), jnp.float32, -bound1, bound1)
    w2 = jax.random.uniform(k3, (hidden_dim, out_dim), jnp.float32, -bound2, bound2)
    b2 = jax.random.uniform(k4, (out_dim,), jnp.float32, -bound2, bound2)
    return w1, b1, w2, b2


def _reference(z, w1, b1, w2, b2):
    """Plain-JAX reference emulating the kernel's bf16 rounding of MXU operands."""
    f32 = jnp.float32
    zb = z.astype(jnp.bfloat16).astype(f32)
    w1b = w1.astype(jnp.bfloat16).astype(f32)
    w2b = w2.astype(jnp.bfloat16).astype(f32)
    h = jnp.maximum(zb @ w1b + b1[None, :], 0.0)
    hb = h.astype(jnp.bfloat16).astype(f32)
    return jax.nn.sigmoid(hb @ w2b + b2[None, :])


if __name__ == "__main__":
    key = jax.random.PRNGKey(0)
    k_param, k_z1, k_z2 = jax.random.split(key, 3)

    z_dim, hidden_dim, out_dim = 20, 500, 28 * 28
    w1, b1, w2, b2 = init_decoder_params(k_param, z_dim, hidden_dim, out_dim)

    # Small batch -> exercises the single-tile (no-grid) path.
    z_small = jax.random.normal(k_z1, (8, z_dim), dtype=jnp.float32)
    mean_small = jax.block_until_ready(decoder_forward(z_small, w1, b1, w2, b2))
    ref_small = _reference(z_small, w1, b1, w2, b2)
    assert mean_small.shape == (8, out_dim)
    assert jnp.allclose(mean_small, ref_small, atol=1e-2, rtol=1e-2)

    # Larger batch -> exercises the batch-tiled grid path (weights resident).
    z_big = jax.random.normal(k_z2, (192, z_dim), dtype=jnp.float32)
    mean_big = jax.block_until_ready(decoder_forward(z_big, w1, b1, w2, b2))
    ref_big = _reference(z_big, w1, b1, w2, b2)
    assert mean_big.shape == (192, out_dim)
    assert jnp.allclose(mean_big, ref_big, atol=1e-2, rtol=1e-2)

    print("KERNEL_OK")
</pallas_src>

<mosaic_0001>
module attributes {stable_mosaic.version = 11 : i64} {
  func.func @decoder_kernel(%arg0: memref<8x20xbf16, #tpu.memory_space<vmem>>, %arg1: memref<20x512xbf16, #tpu.memory_space<vmem>>, %arg2: memref<1x512xf32, #tpu.memory_space<vmem>>, %arg3: memref<512x896xbf16, #tpu.memory_space<vmem>>, %arg4: memref<1x896xf32, #tpu.memory_space<vmem>>, %arg5: memref<8x896xf32, #tpu.memory_space<vmem>>) attributes {dimension_semantics = [], scalar_prefetch = 0 : i64, scratch_operands = 0 : i64, tpu.core_type = #tpu.core_type<tc>} {
    %c0 = arith.constant 0 : index
    %c0_0 = arith.constant 0 : index
    %0 = vector.load %arg0[%c0, %c0_0] : memref<8x20xbf16, #tpu.memory_space<vmem>>, vector<8x20xbf16>
    %c0_1 = arith.constant 0 : index
    %c0_2 = arith.constant 0 : index
    %1 = vector.load %arg1[%c0_1, %c0_2] : memref<20x512xbf16, #tpu.memory_space<vmem>>, vector<20x512xbf16>
    %cst = arith.constant dense<0.000000e+00> : vector<8x512xf32>
    %2 = tpu.matmul %0, %1, %cst {dimension_numbers = #tpu.dot_dimension_numbers<[1], [0], [0], [1], [0, 0, 1, 1], [], []>} : vector<8x20xbf16>, vector<20x512xbf16>, vector<8x512xf32> -> vector<8x512xf32>
    %c0_3 = arith.constant 0 : index
    %c0_4 = arith.constant 0 : index
    %3 = vector.load %arg2[%c0_3, %c0_4] : memref<1x512xf32, #tpu.memory_space<vmem>>, vector<1x512xf32>
    %4 = vector.broadcast %3 : vector<1x512xf32> to vector<8x512xf32>
    %5 = arith.addf %2, %4 : vector<8x512xf32>
    %cst_5 = arith.constant 0.000000e+00 : f32
    %6 = vector.broadcast %cst_5 : f32 to vector<8x512xf32>
    %7 = arith.maximumf %5, %6 : vector<8x512xf32>
    %8 = arith.truncf %7 : vector<8x512xf32> to vector<8x512xbf16>
    %c0_6 = arith.constant 0 : index
    %c0_7 = arith.constant 0 : index
    %9 = vector.load %arg3[%c0_6, %c0_7] : memref<512x896xbf16, #tpu.memory_space<vmem>>, vector<512x896xbf16>
    %cst_8 = arith.constant dense<0.000000e+00> : vector<8x896xf32>
    %10 = tpu.matmul %8, %9, %cst_8 {dimension_numbers = #tpu.dot_dimension_numbers<[1], [0], [0], [1], [0, 0, 1, 1], [], []>} : vector<8x512xbf16>, vector<512x896xbf16>, vector<8x896xf32> -> vector<8x896xf32>
    %c0_9 = arith.constant 0 : index
    %c0_10 = arith.constant 0 : index
    %11 = vector.load %arg4[%c0_9, %c0_10] : memref<1x896xf32, #tpu.memory_space<vmem>>, vector<1x896xf32>
    %12 = vector.broadcast %11 : vector<1x896xf32> to vector<8x896xf32>
    %13 = arith.addf %10, %12 : vector<8x896xf32>
    %cst_11 = arith.constant 0.000000e+00 : f32
    %14 = vector.broadcast %cst_11 : f32 to vector<8x896xf32>
    %15 = arith.subf %14, %13 : vector<8x896xf32>
    %16 = math.exp %15 : vector<8x896xf32>
    %cst_12 = arith.constant 1.000000e+00 : f32
    %17 = vector.broadcast %cst_12 : f32 to vector<8x896xf32>
    %18 = arith.addf %17, %16 : vector<8x896xf32>
    %19 = tpu.reciprocal %18 {approx = true} : vector<8x896xf32> -> vector<8x896xf32>
    %c0_13 = arith.constant 0 : index
    %c0_14 = arith.constant 0 : index
    %20 = vector.load %arg5[%c0_13, %c0_14] : memref<8x896xf32, #tpu.memory_space<vmem>>, vector<8x896xf32>
    tpu.vector_store %arg5[%c0_13, %c0_14], %19 {strides = array<i32>} : memref<8x896xf32, #tpu.memory_space<vmem>>, vector<8x896xf32>,
    return
  }
}

</mosaic_0001>

<bundles_post_ra>
// kernel: tpu_custom_call.1
= control target key start
LH: loop header
LB: loop body
LE: loop exit
PB: predicated region body
PF: predicated region fallthrough
CT: control target
= control target key end

     0   :  { %10 = vsyncpa [#allocation3], 0  ;;  %s2941_s0 = inlined_call_operand.hbm [shape: bf16[8,20], index: 0, kind: input, shape index: {}]   ;;  %s2942_s1 = inlined_call_operand.hbm [shape: bf16[20,512], index: 1, kind: input, shape index: {}]   ;;  %s2943_s2 = inlined_call_operand.hbm [shape: f32[1,512], index: 2, kind: input, shape index: {}]   ;;  %s2944_s3 = inlined_call_operand.hbm [shape: bf16[512,896], index: 3, kind: input, shape index: {}]   ;;  %s2945_s4 = inlined_call_operand.vmem [shape: f32[1,896], index: 4, kind: input, shape index: {}]   ;;  %s2946_s5 = inlined_call_operand.hbm [shape: f32[8,896], index: 5, kind: output, shape index: {}]  }
   0x1   :  { %11 = vsyncpa [#allocation6], 0 }
   0x2   :  { %12 = vsyncpa [#allocation9], 0 }
   0x3   :  { %13 = vsyncpa [#allocation4], 0  ;;  %s2825_s18 = smov [#allocation5]  }
   0x4   :  { %s29_s19 = sshll.u32 %s2825_s18, 4  ;;  %s30_s19 = int_to_ptr.vmem [resolvable:$true] %s29_s19 }
   0x5   :  { %s2725_s20 = scalar_lea.vmem %s30_s19, 768  ;;  %p2730_p1 = scmp.lt.s32.totalorder %s30_s19, %s30_s19 }
   0x6   :  { %p2726_p0 = scmp.ne.s32.totalorder %s30_s19, %s2725_s20  ;;  %p2731_p2 = scmp.lt.s32.totalorder %s2725_s20, %s2725_s20 }
   0x8   :  { %p2732_p3 = por %p2731_p2, %p2730_p1 }
   0xa   :  { %p2733_p4 = pnand %p2732_p3, %p2726_p0 }
   0xc   :  { %2736 = shalt.err (!%p2733_p4)
}
   0xd   :  { %s2826_s21 = smov 256   ;;  %s2827_s22 = smov 16  }
   0xe   :  { %35 = dma.hbm_to_vmem [thread:$0]  %s2942_s1, 768, %s30_s19, [#allocation6], %s2826_s21, %s2826_s21, %s2827_s22  }
   0xf   :  { %s2828_s25 = smov [#allocation2]   ;;  %s2829_s27 = smov [#allocation7]  }
  0x10   :  { %s20_s26 = sshll.u32 %s2828_s25, 4  ;;  %s42_s28 = sshll.u32 %s2829_s27, 4  ;;  %s21_s26 = int_to_ptr.vmem [resolvable:$true] %s20_s26  ;;  %s43_s28 = int_to_ptr.vmem [resolvable:$true] %s42_s28 }
  0x11   :  { %s2745_s29 = scalar_lea.vmem %s21_s26, 64  ;;  %p2750_p6 = scmp.lt.s32.totalorder %s21_s26, %s21_s26 }
  0x12   :  { %p2746_p5 = scmp.ne.s32.totalorder %s21_s26, %s2745_s29  ;;  %p2751_p7 = scmp.lt.s32.totalorder %s2745_s29, %s2745_s29 }
  0x14   :  { %p2752_p8 = por %p2751_p7, %p2750_p6 }
  0x16   :  { %p2753_p9 = pnand %p2752_p8, %p2746_p5 }
  0x18   :  { %2756 = shalt.err (!%p2753_p9)
}
  0x19   :  { %23 = dma.hbm_to_vmem [thread:$0]  %s2941_s0, 64, %s21_s26, [#allocation3]  }
  0x1a   :  { %s2765_s7 = scalar_lea.vmem %s43_s28, 64  ;;  %p2770_p11 = scmp.lt.s32.totalorder %s43_s28, %s43_s28 }
  0x1b   :  { %p2766_p10 = scmp.ne.s32.totalorder %s43_s28, %s2765_s7  ;;  %p2771_p12 = scmp.lt.s32.totalorder %s2765_s7, %s2765_s7 }
  0x1d   :  { %p2772_p13 = por %p2771_p12, %p2770_p11 }
  0x1f   :  { %p2773_p0 = pnand %p2772_p13, %p2766_p10 }
  0x21   :  { %2776 = shalt.err (!%p2773_p0)
}
  0x22   :  { %45 = dma.hbm_to_vmem [thread:$0]  %s2943_s2, 64, %s43_s28, [#allocation6]  }
  0x23   :  { %s2830_s9 = smov [#allocation8]  }
  0x24   :  { %s51_s10 = sshll.u32 %s2830_s9, 4  ;;  %s52_s10 = int_to_ptr.vmem [resolvable:$true] %s51_s10 }
  0x25   :  { %s2785_s11 = scalar_lea.vmem %s52_s10, 28672  ;;  %p2790_p2 = scmp.lt.s32.totalorder %s52_s10, %s52_s10 }
  0x26   :  { %p2786_p1 = scmp.ne.s32.totalorder %s52_s10, %s2785_s11  ;;  %p2791_p3 = scmp.lt.s32.totalorder %s2785_s11, %s2785_s11 }
  0x28   :  { %p2792_p4 = por %p2791_p3, %p2790_p2 }
  0x2a   :  { %p2793_p5 = pnand %p2792_p4, %p2786_p1 }
  0x2c   :  { %2796 = shalt.err (!%p2793_p5)
}
  0x2d   :  { %s2831_s0 = smov 448   ;;  %s2832_s12 = smov 28  }
  0x2e   :  { %57 = dma.hbm_to_vmem [thread:$0]  %s2944_s3, 28672, %s52_s10, [#allocation9], %s2831_s0, %s2831_s0, %s2832_s12  }
  0x2f   :  { %2817 = dma.done.wait [#allocation3], 64  }
  0x30   :  { %2818 = vsyncadd [#allocation3], 4294967232 }
  0x31   :  { %2819 = dma.done.wait [#allocation6], 832  }
  0x32   :  { %2820 = vsyncadd [#allocation6], 4294966464 }
  0x33   :  { %2821 = dma.done.wait [#allocation9], 28672  }
  0x34   :  { %2822 = vsyncadd [#allocation9], 4294938624  ;;  %v2833_v0 = vmov 0   ;;  %v78_v1 = vld [vmem:[#allocation5 + $0x20] sm:$0x33]  ;;  %vm136_vm0 = vcmask 1041408  }
  0x35   :  { %181 = vmatprep.mubr.bf16.mxu0 %v2833_v0  ;;  %222 = vmatprep.mubr.bf16.mxu1 %v2833_v0  ;;  %v79_v2 = vld [vmem:[#allocation5 + $0x28] sm:$0x33]  ;;  %v2074_v3 = vcombine.high %v78_v1, %v78_v1  ;;  %v2073_v5 = vcombine.low %v78_v1, %v78_v1  ;;  %v2363_v7 = vld [vmem:[#allocation5 + $0x4] ss:$16 sps:$4 sm:$0xff]   ;;  %v2367_v11 = vld [vmem:[#allocation5] ss:$16 sps:$4 sm:$0xff]  }
  0x36   :  { %v2076_v4 = vcombine.high %v79_v2, %v79_v2  ;;  %v2075_v6 = vcombine.low %v79_v2, %v79_v2  ;;  %v2365_v8 = vld [vmem:[#allocation5 + $0xc] ss:$16 sps:$4 sm:$0xff]   ;;  %v2368_v12 = vld [vmem:[#allocation5 + $0x8] ss:$16 sps:$4 sm:$0xff]   ;;  %vm132_vm1 = vcmask 162816  }
  0x37   :  { %2077 = vmatprep.subr.msk.bf16.mxu0 %vm136_vm0, %v2074_v3  ;;  %v138_v9 = vsel %vm136_vm0, %v2073_v5, 0  ;;  %v2371_v13 = vld [vmem:[#allocation8 + $0x18c] ss:$28 sps:$4 sm:$0xff]   ;;  %v2377_v18 = vld [vmem:[#allocation8 + $0x154] ss:$28 sps:$4 sm:$0xff]  }
  0x38   :  { %2079 = vmatprep.subr.msk.bf16.mxu1 %vm136_vm0, %v2076_v4  ;;  %v144_v10 = vsel %vm136_vm0, %v2075_v6, 0  ;;  %162 = vmatpush1.bf16.msra.mxu0 %v138_v9  ;;  %v73_v14 = vld [vmem:[#allocation2] sm:$0xf]  ;;  %v2380_v19 = vld [vmem:[#allocation8 + $0x4d4] ss:$28 sps:$4 sm:$0xff]  }
  0x39   :  { %203 = vmatpush1.bf16.msra.mxu1 %v144_v10  ;;  %163 = vmatprep.subr.bf16.mxu0 %v2363_v7  ;;  %v2374_v15 = vld [vmem:[#allocation8 + $0x50c] ss:$28 sps:$4 sm:$0xff]   ;;  %v2383_v22 = vld [vmem:[#allocation8 + $0x11c] ss:$28 sps:$4 sm:$0xff]   ;;  %v2389_v26 = vld [vmem:[#allocation8 + $0xe4] ss:$28 sps:$4 sm:$0xff]  }
  0x3a   :  { %204 = vmatprep.subr.bf16.mxu1 %v2365_v8  ;;  %v2369_v16 = vld [vmem:[#allocation8 + $0x188] ss:$28 sps:$4 sm:$0xff]   ;;  %v2375_v20 = vld [vmem:[#allocation8 + $0x150] ss:$28 sps:$4 sm:$0xff]   ;;  %v2386_v23 = vld [vmem:[#allocation8 + $0x49c] ss:$28 sps:$4 sm:$0xff]  }
  0x3b   :  { %v2372_v17 = vld [vmem:[#allocation8 + $0x508] ss:$28 sps:$4 sm:$0xff]   ;;  %v2378_v21 = vld [vmem:[#allocation8 + $0x4d0] ss:$28 sps:$4 sm:$0xff]   ;;  %v2381_v24 = vld [vmem:[#allocation8 + $0x118] ss:$28 sps:$4 sm:$0xff]  }
  0x3c   :  { %164 = vmatpush1.bf16.msra.mxu0 %v2367_v11  ;;  %v2384_v25 = vld [vmem:[#allocation8 + $0x498] ss:$28 sps:$4 sm:$0xff]   ;;  %v2392_v27 = vld [vmem:[#allocation8 + $0x464] ss:$28 sps:$4 sm:$0xff]   ;;  %v2395_v30 = vld [vmem:[#allocation8 + $0xac] ss:$28 sps:$4 sm:$0xff]  }
  0x3d   :  { %205 = vmatpush1.bf16.msra.mxu1 %v2368_v12  ;;  %1684 = vmatprep.subr.bf16.mxu0 %v2371_v13  ;;  %v2387_v28 = vld [vmem:[#allocation8 + $0xe0] ss:$28 sps:$4 sm:$0xff]   ;;  %v2398_v31 = vld [vmem:[#allocation8 + $0x42c] ss:$28 sps:$4 sm:$0xff]   ;;  %v2401_v34 = vld [vmem:[#allocation8 + $0x74] ss:$28 sps:$4 sm:$0xff]  }
  0x3e   :  { %1725 = vmatprep.subr.bf16.mxu1 %v2374_v15  ;;  %v2390_v29 = vld [vmem:[#allocation8 + $0x460] ss:$28 sps:$4 sm:$0xff]   ;;  %v2393_v32 = vld [vmem:[#allocation8 + $0xa8] ss:$28 sps:$4 sm:$0xff]   ;;  %v2404_v35 = vld [vmem:[#allocation8 + $0x3f4] ss:$28 sps:$4 sm:$0xff]  }
  0x3f   :  { %2078 = vmatmul.mubr.msk.bf16.vlgmr.msra.gmra.mxu0 %vm132_vm1, %v73_v14  ;;  %v2396_v33 = vld [vmem:[#allocation8 + $0x428] ss:$28 sps:$4 sm:$0xff]   ;;  %v2399_v36 = vld [vmem:[#allocation8 + $0x70] ss:$28 sps:$4 sm:$0xff]   ;;  %v2407_v38 = vld [vmem:[#allocation8 + $0x3c] ss:$28 sps:$4 sm:$0xff]  }
  0x40   :  { %2080 = vmatmul.mubr.msk.bf16.vlgmr.msra.gmra.mxu1 %vm132_vm1, %v73_v14  ;;  %1685 = vmatpush1.bf16.msra.mxu0 %v2369_v16  ;;  %v2402_v37 = vld [vmem:[#allocation8 + $0x3f0] ss:$28 sps:$4 sm:$0xff]   ;;  %v2410_v39 = vld [vmem:[#allocation8 + $0x3bc] ss:$28 sps:$4 sm:$0xff]   ;;  %v2413_v42 = vld [vmem:[#allocation8 + $0x4] ss:$28 sps:$4 sm:$0xff]   ;;  %v82_v16 = vlaneseq }
  0x41   :  { %1726 = vmatpush1.bf16.msra.mxu1 %v2372_v17  ;;  %1686 = vmatprep.subr.bf16.mxu0 %v2377_v18  ;;  %v2405_v40 = vld [vmem:[#allocation8 + $0x38] ss:$28 sps:$4 sm:$0xff]   ;;  %v2416_v43 = vld [vmem:[#allocation8 + $0x384] ss:$28 sps:$4 sm:$0xff]   ;;  %v2419_v46 = vld [vmem:[#allocation8 + $0x34c] ss:$28 sps:$4 sm:$0xff]  }
  0x42   :  { %1727 = vmatprep.subr.bf16.mxu1 %v2380_v19  ;;  %v2408_v41 = vld [vmem:[#allocation8 + $0x3b8] ss:$28 sps:$4 sm:$0xff]   ;;  %v2411_v44 = vld [vmem:[#allocation8] ss:$28 sps:$4 sm:$0xff]   ;;  %v2422_v47 = vld [vmem:[#allocation8 + $0x6cc] ss:$28 sps:$4 sm:$0xff]  }
  0x43   :  { %v2414_v45 = vld [vmem:[#allocation8 + $0x380] ss:$28 sps:$4 sm:$0xff]   ;;  %v2417_v48 = vld [vmem:[#allocation8 + $0x348] ss:$28 sps:$4 sm:$0xff]   ;;  %v2425_v50 = vld [vmem:[#allocation8 + $0x314] ss:$28 sps:$4 sm:$0xff]  }
  0x44   :  { %1687 = vmatpush1.bf16.msra.mxu0 %v2375_v20  ;;  %v2420_v49 = vld [vmem:[#allocation8 + $0x6c8] ss:$28 sps:$4 sm:$0xff]   ;;  %v2428_v51 = vld [vmem:[#allocation8 + $0x694] ss:$28 sps:$4 sm:$0xff]   ;;  %v2431_v54 = vld [vmem:[#allocation8 + $0x2dc] ss:$28 sps:$4 sm:$0xff]  }
  0x45   :  { %1728 = vmatpush1.bf16.msra.mxu1 %v2378_v21  ;;  %1688 = vmatprep.subr.bf16.mxu0 %v2383_v22  ;;  %v2423_v52 = vld [vmem:[#allocation8 + $0x310] ss:$28 sps:$4 sm:$0xff]   ;;  %v2434_v55 = vld [vmem:[#allocation8 + $0x65c] ss:$28 sps:$4 sm:$0xff]   ;;  %v2437_v58 = vld [vmem:[#allocation8 + $0x2a4] ss:$28 sps:$4 sm:$0xff]  }
  0x46   :  { %1729 = vmatprep.subr.bf16.mxu1 %v2386_v23  ;;  %v2426_v53 = vld [vmem:[#allocation8 + $0x690] ss:$28 sps:$4 sm:$0xff]   ;;  %v2429_v56 = vld [vmem:[#allocation8 + $0x2d8] ss:$28 sps:$4 sm:$0xff]   ;;  %v2440_v59 = vld [vmem:[#allocation8 + $0x624] ss:$28 sps:$4 sm:$0xff]  }
  0x47   :  { %v2432_v57 = vld [vmem:[#allocation8 + $0x658] ss:$28 sps:$4 sm:$0xff]   ;;  %v2435_v60 = vld [vmem:[#allocation8 + $0x2a0] ss:$28 sps:$4 sm:$0xff]   ;;  %v2443_v62 = vld [vmem:[#allocation8 + $0x26c] ss:$28 sps:$4 sm:$0xff]  }
  0x48   :  { %1689 = vmatpush1.bf16.msra.mxu0 %v2381_v24  ;;  %v2438_v61 = vld [vmem:[#allocation8 + $0x620] ss:$28 sps:$4 sm:$0xff]   ;;  %v2446_v63 = vld [vmem:[#allocation8 + $0x5ec] ss:$28 sps:$4 sm:$0xff]   ;;  %v2449_v2 = vld [vmem:[#allocation8 + $0x234] ss:$28 sps:$4 sm:$0xff]  }
  0x49   :  { %1730 = vmatpush1.bf16.msra.mxu1 %v2384_v25  ;;  %1690 = vmatprep.subr.bf16.mxu0 %v2389_v26  ;;  %v2441_v0 = vld [vmem:[#allocation8 + $0x268] ss:$28 sps:$4 sm:$0xff]   ;;  %v2452_v3 = vld [vmem:[#allocation8 + $0x5b4] ss:$28 sps:$4 sm:$0xff]   ;;  %v2455_v6 = vld [vmem:[#allocation8 + $0x1fc] ss:$28 sps:$4 sm:$0xff]  }
  0x4a   :  { %1731 = vmatprep.subr.bf16.mxu1 %v2392_v27  ;;  %v2444_v1 = vld [vmem:[#allocation8 + $0x5e8] ss:$28 sps:$4 sm:$0xff]   ;;  %v2447_v4 = vld [vmem:[#allocation8 + $0x230] ss:$28 sps:$4 sm:$0xff]   ;;  %v2458_v7 = vld [vmem:[#allocation8 + $0x57c] ss:$28 sps:$4 sm:$0xff]  }
  0x4b   :  { %v2450_v5 = vld [vmem:[#allocation8 + $0x5b0] ss:$28 sps:$4 sm:$0xff]   ;;  %v2453_v8 = vld [vmem:[#allocation8 + $0x1f8] ss:$28 sps:$4 sm:$0xff]   ;;  %v2461_v10 = vld [vmem:[#allocation8 + $0x1c4] ss:$28 sps:$4 sm:$0xff]  }
  0x4c   :  { %1691 = vmatpush1.bf16.msra.mxu0 %v2387_v28  ;;  %v2456_v9 = vld [vmem:[#allocation8 + $0x578] ss:$28 sps:$4 sm:$0xff]   ;;  %v2464_v11 = vld [vmem:[#allocation8 + $0x544] ss:$28 sps:$4 sm:$0xff]   ;;  %v2877_v17 = vshrl.u32 %v82_v16, 7 }
  0x4d   :  { %1732 = vmatpush1.bf16.msra.mxu1 %v2390_v29  ;;  %1692 = vmatprep.subr.bf16.mxu0 %v2395_v30  ;;  %v2459_v12 = vld [vmem:[#allocation8 + $0x1c0] ss:$28 sps:$4 sm:$0xff]   ;;  %v2467_v14 = vld [vmem:[#allocation8 + $0x194] ss:$28 sps:$4 sm:$0xff]  }
  0x4e   :  { %1733 = vmatprep.subr.bf16.mxu1 %v2398_v31  ;;  %v2462_v13 = vld [vmem:[#allocation8 + $0x540] ss:$28 sps:$4 sm:$0xff]   ;;  %v2470_v15 = vld [vmem:[#allocation8 + $0x514] ss:$28 sps:$4 sm:$0xff]   ;;  %v84_v18 = vsub.s32 0, %v2877_v17  ;;  %v92_v19 = vsub.s32 2, %v2877_v17 }
  0x4f   :  { %v80_v20 = vld [vmem:[#allocation7] sm:$0xf]  ;;  %v88_v21 = vsub.s32 1, %v2877_v17  ;;  %v96_v22 = vsub.s32 3, %v2877_v17  ;;  %v2516_v16 = vld [vmem:[#allocation8 + $0x6d0] ss:$28 sps:$4 sm:$0xff]  }
  0x50   :  { %1693 = vmatpush1.bf16.msra.mxu0 %v2393_v32  ;;  %v85_v23 = vrot.slane %v80_v20, %v84_v18  ;;  %v93_v24 = vrot.slane %v80_v20, %v92_v19 }
  0x51   :  { %1734 = vmatpush1.bf16.msra.mxu1 %v2396_v33  ;;  %1694 = vmatprep.subr.bf16.mxu0 %v2401_v34  ;;  %v89_v25 = vrot.slane %v80_v20, %v88_v21  ;;  %v97_v26 = vrot.slane %v80_v20, %v96_v22  ;;  %v2521_v20 = vld [vmem:[#allocation8 + $0x31c] ss:$28 sps:$4 sm:$0xff]  }
  0x52   :  { %1735 = vmatprep.subr.bf16.mxu1 %v2404_v35 }
  0x54   :  { %1695 = vmatpush1.bf16.msra.mxu0 %v2399_v36 }
  0x55   :  { %1736 = vmatpush1.bf16.msra.mxu1 %v2402_v37  ;;  %1696 = vmatprep.subr.bf16.mxu0 %v2407_v38 }
  0x56   :  { %1737 = vmatprep.subr.bf16.mxu1 %v2410_v39 }
  0x58   :  { %1697 = vmatpush1.bf16.msra.mxu0 %v2405_v40 }
  0x59   :  { %1738 = vmatpush1.bf16.msra.mxu1 %v2408_v41  ;;  %1698 = vmatprep.subr.bf16.mxu0 %v2413_v42 }
  0x5a   :  { %1739 = vmatprep.subr.bf16.mxu1 %v2416_v43 }
  0x5c   :  { %1699 = vmatpush1.bf16.msra.mxu0 %v2411_v44 }
  0x5d   :  { %1740 = vmatpush1.bf16.msra.mxu1 %v2414_v45  ;;  %1700 = vmatprep.subr.bf16.mxu0 %v2419_v46  ;;  %v2465_v46 = vld [vmem:[#allocation8 + $0x190] ss:$28 sps:$4 sm:$0xff]  }
  0x5e   :  { %1741 = vmatprep.subr.bf16.mxu1 %v2422_v47  ;;  %v2468_v47 = vld [vmem:[#allocation8 + $0x510] ss:$28 sps:$4 sm:$0xff]  }
  0x60   :  { %1701 = vmatpush2.bf16.msra.mxu0 %v2417_v48 }
  0x61   :  { %1742 = vmatpush2.bf16.msra.mxu1 %v2420_v49  ;;  %1702 = vmatprep.subr.bf16.mxu0 %v2425_v50  ;;  %v2473_v49 = vld [vmem:[#allocation8 + $0x15c] ss:$28 sps:$4 sm:$0xff]  }
  0x62   :  { %1743 = vmatprep.subr.bf16.mxu1 %v2428_v51  ;;  %v2476_v50 = vld [vmem:[#allocation8 + $0x4dc] ss:$28 sps:$4 sm:$0xff]  }
  0x63   :  { %v2471_v51 = vld [vmem:[#allocation8 + $0x158] ss:$28 sps:$4 sm:$0xff]  }
  0x64   :  { %1703 = vmatpush2.bf16.msra.mxu0 %v2423_v52  ;;  %v2474_v52 = vld [vmem:[#allocation8 + $0x4d8] ss:$28 sps:$4 sm:$0xff]  }
  0x65   :  { %1744 = vmatpush2.bf16.msra.mxu1 %v2426_v53  ;;  %1704 = vmatprep.subr.bf16.mxu0 %v2431_v54  ;;  %v2479_v53 = vld [vmem:[#allocation8 + $0x124] ss:$28 sps:$4 sm:$0xff]  }
  0x66   :  { %1745 = vmatprep.subr.bf16.mxu1 %v2434_v55  ;;  %v2482_v54 = vld [vmem:[#allocation8 + $0x4a4] ss:$28 sps:$4 sm:$0xff]  }
  0x67   :  { %v2477_v55 = vld [vmem:[#allocation8 + $0x120] ss:$28 sps:$4 sm:$0xff]  }
  0x68   :  { %1705 = vmatpush2.bf16.msra.mxu0 %v2429_v56  ;;  %v2480_v56 = vld [vmem:[#allocation8 + $0x4a0] ss:$28 sps:$4 sm:$0xff]  }
  0x69   :  { %1746 = vmatpush2.bf16.msra.mxu1 %v2432_v57  ;;  %1706 = vmatprep.subr.bf16.mxu0 %v2437_v58  ;;  %v2485_v57 = vld [vmem:[#allocation8 + $0xec] ss:$28 sps:$4 sm:$0xff]  }
  0x6a   :  { %1747 = vmatprep.subr.bf16.mxu1 %v2440_v59  ;;  %v2488_v58 = vld [vmem:[#allocation8 + $0x46c] ss:$28 sps:$4 sm:$0xff]  }
  0x6b   :  { %v2483_v59 = vld [vmem:[#allocation8 + $0xe8] ss:$28 sps:$4 sm:$0xff]  }
  0x6c   :  { %1707 = vmatpush2.bf16.msra.mxu0 %v2435_v60  ;;  %v2486_v60 = vld [vmem:[#allocation8 + $0x468] ss:$28 sps:$4 sm:$0xff]  }
  0x6d   :  { %1748 = vmatpush2.bf16.msra.mxu1 %v2438_v61  ;;  %1708 = vmatprep.subr.bf16.mxu0 %v2443_v62  ;;  %v2491_v61 = vld [vmem:[#allocation8 + $0xb4] ss:$28 sps:$4 sm:$0xff]  }
  0x6e   :  { %1749 = vmatprep.subr.bf16.mxu1 %v2446_v63  ;;  %v2494_v62 = vld [vmem:[#allocation8 + $0x434] ss:$28 sps:$4 sm:$0xff]  }
  0x6f   :  { %v2489_v63 = vld [vmem:[#allocation8 + $0xb0] ss:$28 sps:$4 sm:$0xff]  }
  0x70   :  { %1709 = vmatpush2.bf16.msra.mxu0 %v2441_v0  ;;  %v2492_v0 = vld [vmem:[#allocation8 + $0x430] ss:$28 sps:$4 sm:$0xff]  }
  0x71   :  { %1750 = vmatpush2.bf16.msra.mxu1 %v2444_v1  ;;  %1710 = vmatprep.subr.bf16.mxu0 %v2449_v2  ;;  %v2497_v1 = vld [vmem:[#allocation8 + $0x7c] ss:$28 sps:$4 sm:$0xff]  }
  0x72   :  { %1751 = vmatprep.subr.bf16.mxu1 %v2452_v3  ;;  %v2500_v2 = vld [vmem:[#allocation8 + $0x3fc] ss:$28 sps:$4 sm:$0xff]  }
  0x73   :  { %v2495_v3 = vld [vmem:[#allocation8 + $0x78] ss:$28 sps:$4 sm:$0xff]  }
  0x74   :  { %1711 = vmatpush2.bf16.msra.mxu0 %v2447_v4  ;;  %v2498_v4 = vld [vmem:[#allocation8 + $0x3f8] ss:$28 sps:$4 sm:$0xff]  }
  0x75   :  { %1752 = vmatpush2.bf16.msra.mxu1 %v2450_v5  ;;  %1712 = vmatprep.subr.bf16.mxu0 %v2455_v6  ;;  %v2503_v5 = vld [vmem:[#allocation8 + $0x44] ss:$28 sps:$4 sm:$0xff]  }
  0x76   :  { %1753 = vmatprep.subr.bf16.mxu1 %v2458_v7  ;;  %v2506_v6 = vld [vmem:[#allocation8 + $0x3c4] ss:$28 sps:$4 sm:$0xff]  }
  0x77   :  { %v2501_v7 = vld [vmem:[#allocation8 + $0x40] ss:$28 sps:$4 sm:$0xff]  }
  0x78   :  { %1713 = vmatpush2.bf16.msra.mxu0 %v2453_v8  ;;  %v2504_v8 = vld [vmem:[#allocation8 + $0x3c0] ss:$28 sps:$4 sm:$0xff]  }
  0x79   :  { %1754 = vmatpush2.bf16.msra.mxu1 %v2456_v9  ;;  %1714 = vmatprep.subr.bf16.mxu0 %v2461_v10  ;;  %v2509_v9 = vld [vmem:[#allocation8 + $0xc] ss:$28 sps:$4 sm:$0xff]  }
  0x7a   :  { %1755 = vmatprep.subr.bf16.mxu1 %v2464_v11  ;;  %v2512_v10 = vld [vmem:[#allocation8 + $0x38c] ss:$28 sps:$4 sm:$0xff]  }
  0x7b   :  { %v2507_v11 = vld [vmem:[#allocation8 + $0x8] ss:$28 sps:$4 sm:$0xff]  }
  0x7c   :  { %1715 = vmatpush2.bf16.msra.mxu0 %v2459_v12  ;;  %v2510_v12 = vld [vmem:[#allocation8 + $0x388] ss:$28 sps:$4 sm:$0xff]  }
  0x7d   :  { %1756 = vmatpush2.bf16.msra.mxu1 %v2462_v13  ;;  %1766 = vmatprep.subr.bf16.mxu0 %v2467_v14  ;;  %v2515_v13 = vld [vmem:[#allocation8 + $0x354] ss:$28 sps:$4 sm:$0xff]  }
  0x7e   :  { %1807 = vmatprep.subr.bf16.mxu1 %v2470_v15  ;;  %v2518_v14 = vld [vmem:[#allocation8 + $0x6d4] ss:$28 sps:$4 sm:$0xff]  }
  0x7f   :  { %v2513_v15 = vld [vmem:[#allocation8 + $0x350] ss:$28 sps:$4 sm:$0xff]  }
  0xff   :  { %v183_v27 = vpop.f32.mrf.mxu0 }
 0x100   :  { %v224_v28 = vpop.f32.mrf.mxu1  ;;  %v184_v29 = vadd.f32 %v183_v27, %v85_v23  ;;  %v2524_v23 = vld [vmem:[#allocation8 + $0x69c] ss:$28 sps:$4 sm:$0xff]   ;;  %v2530_v27 = vld [vmem:[#allocation8 + $0x664] ss:$28 sps:$4 sm:$0xff]  }
 0x101   :  { %v225_v30 = vadd.f32 %v224_v28, %v93_v24  ;;  %v185_v31 = vpop.f32.mrf.mxu0  ;;  %v2519_v24 = vld [vmem:[#allocation8 + $0x318] ss:$28 sps:$4 sm:$0xff]   ;;  %v2525_v28 = vld [vmem:[#allocation8 + $0x2e0] ss:$28 sps:$4 sm:$0xff]  }
 0x102   :  { %v226_v32 = vpop.f32.mrf.mxu1  ;;  %v186_v34 = vadd.f32 %v185_v31, %v89_v25  ;;  %v231_v36 = vmax.f32 %v184_v29, 0.0  ;;  %v2522_v25 = vld [vmem:[#allocation8 + $0x698] ss:$28 sps:$4 sm:$0xff]   ;;  %v2528_v29 = vld [vmem:[#allocation8 + $0x660] ss:$28 sps:$4 sm:$0xff]  }
 0x103   :  { %v233_v33 = vmax.f32 %v225_v30, 0.0  ;;  %v227_v35 = vadd.f32 %v226_v32, %v97_v26  ;;  %v187_v37 = vpop.f32.mrf.mxu0  ;;  %v2527_v26 = vld [vmem:[#allocation8 + $0x2e4] ss:$28 sps:$4 sm:$0xff]   ;;  %v2533_v30 = vld [vmem:[#allocation8 + $0x2ac] ss:$28 sps:$4 sm:$0xff]  }
 0x104   :  { %v228_v38 = vpop.f32.mrf.mxu1  ;;  %v232_v39 = vmax.f32 %v186_v34, 0.0  ;;  %v2897_v48 = vpack.c.bf16 %v231_v36, %v231_v36  ;;  %v2536_v31 = vld [vmem:[#allocation8 + $0x62c] ss:$28 sps:$4 sm:$0xff]   ;;  %v2539_v34 = vld [vmem:[#allocation8 + $0x274] ss:$28 sps:$4 sm:$0xff]  }
 0x105   :  { %v234_v40 = vmax.f32 %v227_v35, 0.0  ;;  %v2891_v41 = vpack.c.bf16 %v233_v33, %v233_v33  ;;  %v188_v42 = vpop.f32.mrf.mxu0  ;;  %v2531_v32 = vld [vmem:[#allocation8 + $0x2a8] ss:$28 sps:$4 sm:$0xff]   ;;  %v2542_v35 = vld [vmem:[#allocation8 + $0x5f4] ss:$28 sps:$4 sm:$0xff]  }
 0x106   :  { %v229_v43 = vpop.f32.mrf.mxu1  ;;  %v2893_v44 = vpack.c.bf16 %v232_v39, %v232_v39  ;;  %v2534_v33 = vld [vmem:[#allocation8 + $0x628] ss:$28 sps:$4 sm:$0xff]   ;;  %v2537_v36 = vld [vmem:[#allocation8 + $0x270] ss:$28 sps:$4 sm:$0xff]   ;;  %v2545_v38 = vld [vmem:[#allocation8 + $0x23c] ss:$28 sps:$4 sm:$0xff]  }
 0x107   :  { %v2895_v45 = vpack.c.bf16 %v234_v40, %v234_v40  ;;  %v2540_v37 = vld [vmem:[#allocation8 + $0x5f0] ss:$28 sps:$4 sm:$0xff]   ;;  %v2548_v39 = vld [vmem:[#allocation8 + $0x5bc] ss:$28 sps:$4 sm:$0xff]   ;;  %v2551_v43 = vld [vmem:[#allocation8 + $0x204] ss:$28 sps:$4 sm:$0xff]  }
 0x108   :  { %1716 = vmatprep.mubr.bf16.mxu0 %v2893_v44  ;;  %v2543_v40 = vld [vmem:[#allocation8 + $0x238] ss:$28 sps:$4 sm:$0xff]  }
 0x109   :  { %1757 = vmatprep.mubr.bf16.mxu1 %v2895_v45  ;;  %1717 = vmatmul.mubr.bf16.vlgmr.msra.gmra.mxu0 %v2897_v48  ;;  %v2546_v42 = vld [vmem:[#allocation8 + $0x5b8] ss:$28 sps:$4 sm:$0xff]  }
 0x10a   :  { %1758 = vmatmul.mubr.bf16.vlgmr.msra.gmra.mxu1 %v2891_v41  ;;  %1767 = vmatpush1.bf16.msra.mxu0 %v2465_v46  ;;  %v2554_v46 = vld [vmem:[#allocation8 + $0x584] ss:$28 sps:$4 sm:$0xff]  }
 0x10b   :  { %1808 = vmatpush1.bf16.msra.mxu1 %v2468_v47  ;;  %1798 = vmatprep.mubr.bf16.mxu0 %v2893_v44  ;;  %v2549_v47 = vld [vmem:[#allocation8 + $0x200] ss:$28 sps:$4 sm:$0xff]  }
 0x10c   :  { %1839 = vmatprep.mubr.bf16.mxu1 %v2895_v45  ;;  %1768 = vmatprep.subr.bf16.mxu0 %v2473_v49  ;;  %v2552_v49 = vld [vmem:[#allocation8 + $0x580] ss:$28 sps:$4 sm:$0xff]  }
 0x10d   :  { %1809 = vmatprep.subr.bf16.mxu1 %v2476_v50  ;;  %v2557_v50 = vld [vmem:[#allocation8 + $0x1cc] ss:$28 sps:$4 sm:$0xff]  }
 0x10e   :  { %1769 = vmatpush1.bf16.msra.mxu0 %v2471_v51  ;;  %v2560_v51 = vld [vmem:[#allocation8 + $0x54c] ss:$28 sps:$4 sm:$0xff]  }
 0x10f   :  { %1810 = vmatpush1.bf16.msra.mxu1 %v2474_v52  ;;  %1770 = vmatprep.subr.bf16.mxu0 %v2479_v53  ;;  %v2555_v52 = vld [vmem:[#allocation8 + $0x1c8] ss:$28 sps:$4 sm:$0xff]  }
 0x110   :  { %1811 = vmatprep.subr.bf16.mxu1 %v2482_v54  ;;  %v2558_v53 = vld [vmem:[#allocation8 + $0x548] ss:$28 sps:$4 sm:$0xff]   ;;  %v2563_v54 = vld [vmem:[#allocation8 + $0x19c] ss:$28 sps:$4 sm:$0xff]  }
 0x112   :  { %1771 = vmatpush1.bf16.msra.mxu0 %v2477_v55  ;;  %v2566_v55 = vld [vmem:[#allocation8 + $0x51c] ss:$28 sps:$4 sm:$0xff]  }
 0x113   :  { %1812 = vmatpush1.bf16.msra.mxu1 %v2480_v56  ;;  %1772 = vmatprep.subr.bf16.mxu0 %v2485_v57  ;;  %v2561_v56 = vld [vmem:[#allocation8 + $0x198] ss:$28 sps:$4 sm:$0xff]  }
 0x114   :  { %1813 = vmatprep.subr.bf16.mxu1 %v2488_v58  ;;  %v2564_v57 = vld [vmem:[#allocation8 + $0x518] ss:$28 sps:$4 sm:$0xff]   ;;  %v2569_v58 = vld [vmem:[#allocation8 + $0x164] ss:$28 sps:$4 sm:$0xff]  }
 0x116   :  { %1773 = vmatpush1.bf16.msra.mxu0 %v2483_v59  ;;  %v2572_v59 = vld [vmem:[#allocation8 + $0x4e4] ss:$28 sps:$4 sm:$0xff]  }
 0x117   :  { %1814 = vmatpush1.bf16.msra.mxu1 %v2486_v60  ;;  %1774 = vmatprep.subr.bf16.mxu0 %v2491_v61  ;;  %v2567_v60 = vld [vmem:[#allocation8 + $0x160] ss:$28 sps:$4 sm:$0xff]  }
 0x118   :  { %1815 = vmatprep.subr.bf16.mxu1 %v2494_v62  ;;  %v2570_v61 = vld [vmem:[#allocation8 + $0x4e0] ss:$28 sps:$4 sm:$0xff]   ;;  %v2575_v62 = vld [vmem:[#allocation8 + $0x12c] ss:$28 sps:$4 sm:$0xff]  }
 0x11a   :  { %1775 = vmatpush1.bf16.msra.mxu0 %v2489_v63  ;;  %v2578_v63 = vld [vmem:[#allocation8 + $0x4ac] ss:$28 sps:$4 sm:$0xff]  }
 0x11b   :  { %1816 = vmatpush1.bf16.msra.mxu1 %v2492_v0  ;;  %1776 = vmatprep.subr.bf16.mxu0 %v2497_v1  ;;  %v2573_v0 = vld [vmem:[#allocation8 + $0x128] ss:$28 sps:$4 sm:$0xff]  }
 0x11c   :  { %1817 = vmatprep.subr.bf16.mxu1 %v2500_v2  ;;  %v2576_v1 = vld [vmem:[#allocation8 + $0x4a8] ss:$28 sps:$4 sm:$0xff]   ;;  %v2581_v2 = vld [vmem:[#allocation8 + $0xf4] ss:$28 sps:$4 sm:$0xff]  }
 0x11e   :  { %1777 = vmatpush1.bf16.msra.mxu0 %v2495_v3  ;;  %v2584_v3 = vld [vmem:[#allocation8 + $0x474] ss:$28 sps:$4 sm:$0xff]  }
 0x11f   :  { %1818 = vmatpush1.bf16.msra.mxu1 %v2498_v4  ;;  %1778 = vmatprep.subr.bf16.mxu0 %v2503_v5  ;;  %v2579_v4 = vld [vmem:[#allocation8 + $0xf0] ss:$28 sps:$4 sm:$0xff]  }
 0x120   :  { %1819 = vmatprep.subr.bf16.mxu1 %v2506_v6  ;;  %v2582_v5 = vld [vmem:[#allocation8 + $0x470] ss:$28 sps:$4 sm:$0xff]   ;;  %v2587_v6 = vld [vmem:[#allocation8 + $0xbc] ss:$28 sps:$4 sm:$0xff]  }
 0x122   :  { %1779 = vmatpush1.bf16.msra.mxu0 %v2501_v7  ;;  %v2590_v7 = vld [vmem:[#allocation8 + $0x43c] ss:$28 sps:$4 sm:$0xff]  }
 0x123   :  { %1820 = vmatpush1.bf16.msra.mxu1 %v2504_v8  ;;  %1780 = vmatprep.subr.bf16.mxu0 %v2509_v9  ;;  %v2585_v8 = vld [vmem:[#allocation8 + $0xb8] ss:$28 sps:$4 sm:$0xff]  }
 0x124   :  { %1821 = vmatprep.subr.bf16.mxu1 %v2512_v10  ;;  %v2588_v9 = vld [vmem:[#allocation8 + $0x438] ss:$28 sps:$4 sm:$0xff]   ;;  %v2593_v10 = vld [vmem:[#allocation8 + $0x84] ss:$28 sps:$4 sm:$0xff]  }
 0x126   :  { %1781 = vmatpush1.bf16.msra.mxu0 %v2507_v11  ;;  %v2596_v11 = vld [vmem:[#allocation8 + $0x404] ss:$28 sps:$4 sm:$0xff]  }
 0x127   :  { %1822 = vmatpush1.bf16.msra.mxu1 %v2510_v12  ;;  %1782 = vmatprep.subr.bf16.mxu0 %v2515_v13  ;;  %v2591_v12 = vld [vmem:[#allocation8 + $0x80] ss:$28 sps:$4 sm:$0xff]  }
 0x128   :  { %1823 = vmatprep.subr.bf16.mxu1 %v2518_v14  ;;  %v2594_v13 = vld [vmem:[#allocation8 + $0x400] ss:$28 sps:$4 sm:$0xff]   ;;  %v2599_v14 = vld [vmem:[#allocation8 + $0x4c] ss:$28 sps:$4 sm:$0xff]  }
 0x12a   :  { %1783 = vmatpush2.bf16.msra.mxu0 %v2513_v15  ;;  %v2602_v15 = vld [vmem:[#allocation8 + $0x3cc] ss:$28 sps:$4 sm:$0xff]  }
 0x12b   :  { %1824 = vmatpush2.bf16.msra.mxu1 %v2516_v16  ;;  %1784 = vmatprep.subr.bf16.mxu0 %v2521_v20  ;;  %v2597_v16 = vld [vmem:[#allocation8 + $0x48] ss:$28 sps:$4 sm:$0xff]  }
 0x12c   :  { %1825 = vmatprep.subr.bf16.mxu1 %v2524_v23  ;;  %v2600_v20 = vld [vmem:[#allocation8 + $0x3c8] ss:$28 sps:$4 sm:$0xff]   ;;  %v2605_v23 = vld [vmem:[#allocation8 + $0x14] ss:$28 sps:$4 sm:$0xff]  }
 0x12e   :  { %1785 = vmatpush2.bf16.msra.mxu0 %v2519_v24  ;;  %v2608_v24 = vld [vmem:[#allocation8 + $0x394] ss:$28 sps:$4 sm:$0xff]  }
 0x12f   :  { %1826 = vmatpush2.bf16.msra.mxu1 %v2522_v25  ;;  %1786 = vmatprep.subr.bf16.mxu0 %v2527_v26  ;;  %v2603_v25 = vld [vmem:[#allocation8 + $0x10] ss:$28 sps:$4 sm:$0xff]  }
 0x130   :  { %1827 = vmatprep.subr.bf16.mxu1 %v2530_v27  ;;  %v2606_v26 = vld [vmem:[#allocation8 + $0x390] ss:$28 sps:$4 sm:$0xff]   ;;  %v2611_v27 = vld [vmem:[#allocation8 + $0x35c] ss:$28 sps:$4 sm:$0xff]  }
 0x132   :  { %1787 = vmatpush2.bf16.msra.mxu0 %v2525_v28  ;;  %v2614_v28 = vld [vmem:[#allocation8 + $0x6dc] ss:$28 sps:$4 sm:$0xff]  }
 0x133   :  { %1828 = vmatpush2.bf16.msra.mxu1 %v2528_v29  ;;  %1788 = vmatprep.subr.bf16.mxu0 %v2533_v30  ;;  %v2609_v29 = vld [vmem:[#allocation8 + $0x358] ss:$28 sps:$4 sm:$0xff]  }
 0x134   :  { %1829 = vmatprep.subr.bf16.mxu1 %v2536_v31  ;;  %v2612_v30 = vld [vmem:[#allocation8 + $0x6d8] ss:$28 sps:$4 sm:$0xff]   ;;  %v2617_v31 = vld [vmem:[#allocation8 + $0x324] ss:$28 sps:$4 sm:$0xff]  }
 0x136   :  { %1789 = vmatpush2.bf16.msra.mxu0 %v2531_v32  ;;  %v2620_v32 = vld [vmem:[#allocation8 + $0x6a4] ss:$28 sps:$4 sm:$0xff]  }
 0x137   :  { %1830 = vmatpush2.bf16.msra.mxu1 %v2534_v33  ;;  %1790 = vmatprep.subr.bf16.mxu0 %v2539_v34  ;;  %v2615_v33 = vld [vmem:[#allocation8 + $0x320] ss:$28 sps:$4 sm:$0xff]  }
 0x138   :  { %1831 = vmatprep.subr.bf16.mxu1 %v2542_v35  ;;  %v2618_v34 = vld [vmem:[#allocation8 + $0x6a0] ss:$28 sps:$4 sm:$0xff]   ;;  %v2623_v35 = vld [vmem:[#allocation8 + $0x2ec] ss:$28 sps:$4 sm:$0xff]  }
 0x13a   :  { %1791 = vmatpush2.bf16.msra.mxu0 %v2537_v36  ;;  %v2626_v36 = vld [vmem:[#allocation8 + $0x66c] ss:$28 sps:$4 sm:$0xff]  }
 0x13b   :  { %1832 = vmatpush2.bf16.msra.mxu1 %v2540_v37  ;;  %1792 = vmatprep.subr.bf16.mxu0 %v2545_v38  ;;  %v2621_v37 = vld [vmem:[#allocation8 + $0x2e8] ss:$28 sps:$4 sm:$0xff]  }
 0x13c   :  { %1833 = vmatprep.subr.bf16.mxu1 %v2548_v39  ;;  %v2624_v38 = vld [vmem:[#allocation8 + $0x668] ss:$28 sps:$4 sm:$0xff]   ;;  %v2629_v39 = vld [vmem:[#allocation8 + $0x2b4] ss:$28 sps:$4 sm:$0xff]  }
 0x13e   :  { %1793 = vmatpush2.bf16.msra.mxu0 %v2543_v40  ;;  %v2632_v40 = vld [vmem:[#allocation8 + $0x634] ss:$28 sps:$4 sm:$0xff]  }
 0x13f   :  { %1834 = vmatpush2.bf16.msra.mxu1 %v2546_v42  ;;  %1794 = vmatprep.subr.bf16.mxu0 %v2551_v43  ;;  %v2627_v42 = vld [vmem:[#allocation8 + $0x2b0] ss:$28 sps:$4 sm:$0xff]  }
 0x140   :  { %1835 = vmatprep.subr.bf16.mxu1 %v2554_v46  ;;  %v2630_v43 = vld [vmem:[#allocation8 + $0x630] ss:$28 sps:$4 sm:$0xff]   ;;  %v2635_v46 = vld [vmem:[#allocation8 + $0x27c] ss:$28 sps:$4 sm:$0xff]  }
 0x142   :  { %1795 = vmatpush2.bf16.msra.mxu0 %v2549_v47  ;;  %v2638_v47 = vld [vmem:[#allocation8 + $0x5fc] ss:$28 sps:$4 sm:$0xff]  }
 0x143   :  { %1836 = vmatpush2.bf16.msra.mxu1 %v2552_v49  ;;  %1796 = vmatprep.subr.bf16.mxu0 %v2557_v50  ;;  %v2633_v49 = vld [vmem:[#allocation8 + $0x278] ss:$28 sps:$4 sm:$0xff]  }
 0x144   :  { %1837 = vmatprep.subr.bf16.mxu1 %v2560_v51  ;;  %v2636_v50 = vld [vmem:[#allocation8 + $0x5f8] ss:$28 sps:$4 sm:$0xff]   ;;  %v2641_v51 = vld [vmem:[#allocation8 + $0x244] ss:$28 sps:$4 sm:$0xff]  }
 0x146   :  { %1797 = vmatpush2.bf16.msra.mxu0 %v2555_v52  ;;  %v2644_v52 = vld [vmem:[#allocation8 + $0x5c4] ss:$28 sps:$4 sm:$0xff]  }
 0x147   :  { %1838 = vmatpush2.bf16.msra.mxu1 %v2558_v53  ;;  %1848 = vmatprep.subr.bf16.mxu0 %v2563_v54  ;;  %v2639_v53 = vld [vmem:[#allocation8 + $0x240] ss:$28 sps:$4 sm:$0xff]  }
 0x148   :  { %1889 = vmatprep.subr.bf16.mxu1 %v2566_v55  ;;  %v2642_v54 = vld [vmem:[#allocation8 + $0x5c0] ss:$28 sps:$4 sm:$0xff]   ;;  %v2647_v55 = vld [vmem:[#allocation8 + $0x20c] ss:$28 sps:$4 sm:$0xff]  }
 0x149   :  { %1799 = vmatmul.mubr.bf16.vlgmr.msra.gmra.mxu0 %v2897_v48 }
 0x14a   :  { %1840 = vmatmul.mubr.bf16.vlgmr.msra.gmra.mxu1 %v2891_v41  ;;  %1849 = vmatpush1.bf16.msra.mxu0 %v2561_v56  ;;  %v2650_v56 = vld [vmem:[#allocation8 + $0x58c] ss:$28 sps:$4 sm:$0xff]  }
 0x14b   :  { %1880 = vmatprep.mubr.bf16.mxu0 %v2893_v44  ;;  %1890 = vmatpush1.bf16.msra.mxu1 %v2564_v57  ;;  %v2645_v57 = vld [vmem:[#allocation8 + $0x208] ss:$28 sps:$4 sm:$0xff]  }
 0x14c   :  { %1921 = vmatprep.mubr.bf16.mxu1 %v2895_v45  ;;  %1850 = vmatprep.subr.bf16.mxu0 %v2569_v58  ;;  %v2648_v58 = vld [vmem:[#allocation8 + $0x588] ss:$28 sps:$4 sm:$0xff]  }
 0x14d   :  { %1891 = vmatprep.subr.bf16.mxu1 %v2572_v59  ;;  %v2653_v59 = vld [vmem:[#allocation8 + $0x1d4] ss:$28 sps:$4 sm:$0xff]  }
 0x14e   :  { %1851 = vmatpush1.bf16.msra.mxu0 %v2567_v60  ;;  %v2656_v60 = vld [vmem:[#allocation8 + $0x554] ss:$28 sps:$4 sm:$0xff]  }
 0x14f   :  { %1892 = vmatpush1.bf16.msra.mxu1 %v2570_v61  ;;  %1852 = vmatprep.subr.bf16.mxu0 %v2575_v62  ;;  %v2651_v61 = vld [vmem:[#allocation8 + $0x1d0] ss:$28 sps:$4 sm:$0xff]  }
 0x150   :  { %1893 = vmatprep.subr.bf16.mxu1 %v2578_v63  ;;  %v2654_v62 = vld [vmem:[#allocation8 + $0x550] ss:$28 sps:$4 sm:$0xff]   ;;  %v2657_v63 = vld [vmem:[#allocation8 + $0x360] ss:$28 sps:$4 sm:$0xff]  }
 0x152   :  { %1853 = vmatpush1.bf16.msra.mxu0 %v2573_v0  ;;  %v2658_v0 = vld [vmem:[#allocation8 + $0x6e0] ss:$28 sps:$4 sm:$0xff]  }
 0x153   :  { %1894 = vmatpush1.bf16.msra.mxu1 %v2576_v1  ;;  %1854 = vmatprep.subr.bf16.mxu0 %v2581_v2  ;;  %v2659_v1 = vld [vmem:[#allocation8 + $0x1a0] ss:$28 sps:$4 sm:$0xff]  }
 0x154   :  { %1895 = vmatprep.subr.bf16.mxu1 %v2584_v3  ;;  %v2660_v2 = vld [vmem:[#allocation8 + $0x520] ss:$28 sps:$4 sm:$0xff]   ;;  %v2661_v3 = vld [vmem:[#allocation8 + $0x328] ss:$28 sps:$4 sm:$0xff]  }
 0x156   :  { %1855 = vmatpush1.bf16.msra.mxu0 %v2579_v4  ;;  %v2662_v4 = vld [vmem:[#allocation8 + $0x6a8] ss:$28 sps:$4 sm:$0xff]  }
 0x157   :  { %1896 = vmatpush1.bf16.msra.mxu1 %v2582_v5  ;;  %1856 = vmatprep.subr.bf16.mxu0 %v2587_v6  ;;  %v2663_v5 = vld [vmem:[#allocation8 + $0x168] ss:$28 sps:$4 sm:$0xff]  }
 0x158   :  { %1897 = vmatprep.subr.bf16.mxu1 %v2590_v7  ;;  %v2664_v6 = vld [vmem:[#allocation8 + $0x4e8] ss:$28 sps:$4 sm:$0xff]   ;;  %v2665_v7 = vld [vmem:[#allocation8 + $0x2f0] ss:$28 sps:$4 sm:$0xff]  }
 0x15a   :  { %1857 = vmatpush1.bf16.msra.mxu0 %v2585_v8  ;;  %v2666_v8 = vld [vmem:[#allocation8 + $0x670] ss:$28 sps:$4 sm:$0xff]  }
 0x15b   :  { %1898 = vmatpush1.bf16.msra.mxu1 %v2588_v9  ;;  %1858 = vmatprep.subr.bf16.mxu0 %v2593_v10  ;;  %v2667_v9 = vld [vmem:[#allocation8 + $0x130] ss:$28 sps:$4 sm:$0xff]  }
 0x15c   :  { %1899 = vmatprep.subr.bf16.mxu1 %v2596_v11  ;;  %v2668_v10 = vld [vmem:[#allocation8 + $0x4b0] ss:$28 sps:$4 sm:$0xff]   ;;  %v2669_v11 = vld [vmem:[#allocation8 + $0x2b8] ss:$28 sps:$4 sm:$0xff]  }
 0x15e   :  { %1859 = vmatpush1.bf16.msra.mxu0 %v2591_v12  ;;  %v2670_v12 = vld [vmem:[#allocation8 + $0x638] ss:$28 sps:$4 sm:$0xff]  }
 0x15f   :  { %1900 = vmatpush1.bf16.msra.mxu1 %v2594_v13  ;;  %1860 = vmatprep.subr.bf16.mxu0 %v2599_v14  ;;  %v2671_v13 = vld [vmem:[#allocation8 + $0xf8] ss:$28 sps:$4 sm:$0xff]   ;;  %v2673_v14 = vld [vmem:[#allocation8 + $0x280] ss:$28 sps:$4 sm:$0xff]  }
 0x160   :  { %1901 = vmatprep.subr.bf16.mxu1 %v2602_v15  ;;  %v2674_v15 = vld [vmem:[#allocation8 + $0x600] ss:$28 sps:$4 sm:$0xff]  }
 0x162   :  { %1861 = vmatpush1.bf16.msra.mxu0 %v2597_v16  ;;  %v2676_v16 = vld [vmem:[#allocation8 + $0x440] ss:$28 sps:$4 sm:$0xff]  }
 0x163   :  { %1902 = vmatpush1.bf16.msra.mxu1 %v2600_v20  ;;  %1862 = vmatprep.subr.bf16.mxu0 %v2605_v23  ;;  %v2677_v20 = vld [vmem:[#allocation8 + $0x248] ss:$28 sps:$4 sm:$0xff]  }
 0x164   :  { %1903 = vmatprep.subr.bf16.mxu1 %v2608_v24  ;;  %v2678_v23 = vld [vmem:[#allocation8 + $0x5c8] ss:$28 sps:$4 sm:$0xff]  }
 0x165   :  { %v2679_v24 = vld [vmem:[#allocation8 + $0x88] ss:$28 sps:$4 sm:$0xff]  }
 0x166   :  { %1863 = vmatpush1.bf16.msra.mxu0 %v2603_v25  ;;  %v2680_v25 = vld [vmem:[#allocation8 + $0x408] ss:$28 sps:$4 sm:$0xff]  }
 0x167   :  { %1904 = vmatpush1.bf16.msra.mxu1 %v2606_v26  ;;  %1864 = vmatprep.subr.bf16.mxu0 %v2611_v27  ;;  %v2681_v26 = vld [vmem:[#allocation8 + $0x210] ss:$28 sps:$4 sm:$0xff]  }
 0x168   :  { %1905 = vmatprep.subr.bf16.mxu1 %v2614_v28  ;;  %v2682_v27 = vld [vmem:[#allocation8 + $0x590] ss:$28 sps:$4 sm:$0xff]  }
 0x169   :  { %v2683_v28 = vld [vmem:[#allocation8 + $0x50] ss:$28 sps:$4 sm:$0xff]  }
 0x16a   :  { %1865 = vmatpush2.bf16.msra.mxu0 %v2609_v29  ;;  %v2684_v29 = vld [vmem:[#allocation8 + $0x3d0] ss:$28 sps:$4 sm:$0xff]  }
 0x16b   :  { %1906 = vmatpush2.bf16.msra.mxu1 %v2612_v30  ;;  %1866 = vmatprep.subr.bf16.mxu0 %v2617_v31  ;;  %v2685_v30 = vld [vmem:[#allocation8 + $0x1d8] ss:$28 sps:$4 sm:$0xff]  }
 0x16c   :  { %1907 = vmatprep.subr.bf16.mxu1 %v2620_v32  ;;  %v2686_v31 = vld [vmem:[#allocation8 + $0x558] ss:$28 sps:$4 sm:$0xff]  }
 0x16d   :  { %v2687_v32 = vld [vmem:[#allocation8 + $0x18] ss:$28 sps:$4 sm:$0xff]  }
 0x16e   :  { %1867 = vmatpush2.bf16.msra.mxu0 %v2615_v33  ;;  %v2688_v33 = vld [vmem:[#allocation8 + $0x398] ss:$28 sps:$4 sm:$0xff]  }
 0x16f   :  { %1908 = vmatpush2.bf16.msra.mxu1 %v2618_v34  ;;  %1868 = vmatprep.subr.bf16.mxu0 %v2623_v35  ;;  %v2918_v34 = vld [vmem:[%s2945_s4] sm:$0xff]  ;;  %s2834_s4 = smov [#allocation10]  }
 0x170   :  { %1909 = vmatprep.subr.bf16.mxu1 %v2626_v36  ;;  %v500_v35 = vrot.slane %v2918_v34, %v84_v18  ;;  %v504_v36 = vrot.slane %v2918_v34, %v88_v21  ;;  %s2058_s15 = sshll.u32 %s2834_s4, 4  ;;  %s2059_s15 = int_to_ptr.vmem [resolvable:$true] %s2058_s15 }
 0x171   :  { %s2797_s16 = scalar_lea.vmem %s2059_s15, 896  ;;  %p2802_p7 = scmp.lt.s32.totalorder %s2059_s15, %s2059_s15 }
 0x172   :  { %1869 = vmatpush2.bf16.msra.mxu0 %v2621_v37  ;;  %p2798_p6 = scmp.ne.s32.totalorder %s2059_s15, %s2797_s16  ;;  %p2803_p8 = scmp.lt.s32.totalorder %s2797_s16, %s2797_s16 }
 0x173   :  { %1910 = vmatpush2.bf16.msra.mxu1 %v2624_v38  ;;  %1870 = vmatprep.subr.bf16.mxu0 %v2629_v39 }
 0x174   :  { %1911 = vmatprep.subr.bf16.mxu1 %v2632_v40  ;;  %p2804_p9 = por %p2803_p8, %p2802_p7 }
 0x176   :  { %1871 = vmatpush2.bf16.msra.mxu0 %v2627_v42  ;;  %p2805_p10 = pnand %p2804_p9, %p2798_p6 }
 0x177   :  { %1912 = vmatpush2.bf16.msra.mxu1 %v2630_v43  ;;  %1872 = vmatprep.subr.bf16.mxu0 %v2635_v46 }
 0x178   :  { %1913 = vmatprep.subr.bf16.mxu1 %v2638_v47 }
 0x17a   :  { %1873 = vmatpush2.bf16.msra.mxu0 %v2633_v49 }
 0x17b   :  { %1914 = vmatpush2.bf16.msra.mxu1 %v2636_v50  ;;  %1874 = vmatprep.subr.bf16.mxu0 %v2641_v51 }
 0x17c   :  { %1915 = vmatprep.subr.bf16.mxu1 %v2644_v52 }
 0x17e   :  { %1875 = vmatpush2.bf16.msra.mxu0 %v2639_v53 }
 0x17f   :  { %1916 = vmatpush2.bf16.msra.mxu1 %v2642_v54  ;;  %1876 = vmatprep.subr.bf16.mxu0 %v2647_v55 }
 0x180   :  { %1917 = vmatprep.subr.bf16.mxu1 %v2650_v56 }
 0x182   :  { %1877 = vmatpush2.bf16.msra.mxu0 %v2645_v57 }
 0x183   :  { %1918 = vmatpush2.bf16.msra.mxu1 %v2648_v58  ;;  %1878 = vmatprep.subr.bf16.mxu0 %v2653_v59  ;;  %v508_v59 = vrot.slane %v2918_v34, %v92_v19 }
 0x184   :  { %1919 = vmatprep.subr.bf16.mxu1 %v2656_v60  ;;  %v512_v60 = vrot.slane %v2918_v34, %v96_v22 }
 0x186   :  { %1879 = vmatpush2.bf16.msra.mxu0 %v2651_v61 }
 0x187   :  { %1920 = vmatpush2.bf16.msra.mxu1 %v2654_v62  ;;  %2305 = vmatprep.subr.bf16.mxu0 %v2657_v63 }
 0x188   :  { %2327 = vmatprep.subr.bf16.mxu1 %v2658_v0 }
 0x189   :  { %1881 = vmatmul.mubr.bf16.vlgmr.msra.gmra.mxu0 %v2897_v48 }
 0x18a   :  { %1922 = vmatmul.mubr.bf16.vlgmr.msra.gmra.mxu1 %v2891_v41  ;;  %2306 = vmatpush3.bf16.msra.mxu0 %v2659_v1 }
 0x18b   :  { %1962 = vmatprep.mubr.bf16.mxu0 %v2893_v44  ;;  %2328 = vmatpush3.bf16.msra.mxu1 %v2660_v2  ;;  %v2672_v44 = vld [vmem:[#allocation8 + $0x478] ss:$28 sps:$4 sm:$0xff]  }
 0x18c   :  { %2002 = vmatprep.mubr.bf16.mxu1 %v2895_v45  ;;  %2307 = vmatprep.subr.bf16.mxu0 %v2661_v3  ;;  %v2675_v45 = vld [vmem:[#allocation8 + $0xc0] ss:$28 sps:$4 sm:$0xff]  }
 0x18d   :  { %2329 = vmatprep.subr.bf16.mxu1 %v2662_v4 }
 0x18e   :  { %2308 = vmatpush3.bf16.msra.mxu0 %v2663_v5 }
 0x18f   :  { %2330 = vmatpush3.bf16.msra.mxu1 %v2664_v6  ;;  %2309 = vmatprep.subr.bf16.mxu0 %v2665_v7 }
 0x190   :  { %2331 = vmatprep.subr.bf16.mxu1 %v2666_v8 }
 0x192   :  { %2310 = vmatpush3.bf16.msra.mxu0 %v2667_v9 }
 0x193   :  { %2332 = vmatpush3.bf16.msra.mxu1 %v2668_v10  ;;  %2311 = vmatprep.subr.bf16.mxu0 %v2669_v11 }
 0x194   :  { %2333 = vmatprep.subr.bf16.mxu1 %v2670_v12 }
 0x196   :  { %2312 = vmatpush3.bf16.msra.mxu0 %v2671_v13 }
 0x197   :  { %2334 = vmatpush3.bf16.msra.mxu1 %v2672_v44  ;;  %2313 = vmatprep.subr.bf16.mxu0 %v2673_v14 }
 0x198   :  { %2335 = vmatprep.subr.bf16.mxu1 %v2674_v15 }
 0x19a   :  { %2314 = vmatpush3.bf16.msra.mxu0 %v2675_v45  ;;  %v515_v45 = vsub.s32 4, %v2877_v17 }
 0x19b   :  { %2336 = vmatpush3.bf16.msra.mxu1 %v2676_v16  ;;  %2315 = vmatprep.subr.bf16.mxu0 %v2677_v20  ;;  %v519_v16 = vsub.s32 5, %v2877_v17 }
 0x19c   :  { %2337 = vmatprep.subr.bf16.mxu1 %v2678_v23  ;;  %v516_v20 = vrot.slane %v2918_v34, %v515_v45 }
 0x19d   :  { %v520_v23 = vrot.slane %v2918_v34, %v519_v16 }
 0x19e   :  { %2316 = vmatpush3.bf16.msra.mxu0 %v2679_v24 }
 0x19f   :  { %2338 = vmatpush3.bf16.msra.mxu1 %v2680_v25  ;;  %2317 = vmatprep.subr.bf16.mxu0 %v2681_v26 }
 0x1a0   :  { %2339 = vmatprep.subr.bf16.mxu1 %v2682_v27 }
 0x1a2   :  { %2318 = vmatpush3.bf16.msra.mxu0 %v2683_v28 }
 0x1a3   :  { %2340 = vmatpush3.bf16.msra.mxu1 %v2684_v29  ;;  %2319 = vmatprep.subr.bf16.mxu0 %v2685_v30 }
 0x1a4   :  { %2341 = vmatprep.subr.bf16.mxu1 %v2686_v31 }
 0x1a6   :  { %2320 = vmatpush3.bf16.msra.mxu0 %v2687_v32 }
 0x1a7   :  { %2342 = vmatpush3.bf16.msra.mxu1 %v2688_v33 }
 0x1a9   :  { %1963 = vmatmul.mubr.bf16.vlgmr.msra.gmra.mxu0 %v2897_v48 }
 0x1aa   :  { %2003 = vmatmul.mubr.bf16.vlgmr.msra.gmra.mxu1 %v2891_v41 }
 0x1c9   :  { %v1718_v37 = vpop.f32.mrf.mxu0 }
 0x1ca   :  { %v1759_v38 = vpop.f32.mrf.mxu1  ;;  %v1719_v39 = vadd.f32 %v1718_v37, %v500_v35 }
 0x1cb   :  { %v1720_v40 = vpop.f32.mrf.mxu0 }
 0x1cc   :  { %v1761_v48 = vpop.f32.mrf.mxu1  ;;  %v1760_v42 = vadd.f32 %v1759_v38, %v1719_v39  ;;  %v1721_v41 = vadd.f32 %v1720_v40, %v504_v36 }
 0x1cd   :  { %v1722_v43 = vpop.f32.mrf.mxu0 }
 0x1ce   :  { %v1763_v46 = vpop.f32.mrf.mxu1  ;;  %v2010_v47 = vsub.f32 0.0, %v1760_v42  ;;  %v1762_v49 = vadd.f32 %v1761_v48, %v1721_v41 }
 0x1cf   :  { %v1723_v50 = vpop.f32.mrf.mxu0  ;;  %v523_v46 = vsub.s32 6, %v2877_v17 }
 0x1d0   :  { %v1764_v51 = vpop.f32.mrf.mxu1  ;;  %v2017_v52 = vmul.f32 1.442695, %v2010_v47  ;;  %v2011_v53 = vsub.f32 0.0, %v1762_v49 }
 0x1d1   :  { %v524_v50 = vrot.slane %v2918_v34, %v523_v46 }
 0x1d2   :  { %2689 = vpow2.f32 %v2017_v52  ;;  %v2019_v18 = vmul.f32 1.442695, %v2011_v53 }
 0x1d4   :  { %2691 = vpow2.f32 %v2019_v18 }
 0x1df   :  { %v2690_v54 = vpop.eup %2689 }
 0x1e0   :  { %v2031_v21 = vadd.f32 1.0, %v2690_v54 }
 0x1e1   :  { %v2692_v55 = vpop.eup %2691 }
 0x1e2   :  { %2693 = vrcp.f32 %v2031_v21  ;;  %v2032_v56 = vadd.f32 1.0, %v2692_v55 }
 0x1e4   :  { %2695 = vrcp.f32 %v2032_v56 }
 0x1ef   :  { %v2694_v57 = vpop.eup %2693 }
 0x1f0   :  { %2045 = vst [vmem:[#allocation10] sm:$0xff] %v2694_v57 }
 0x1f1   :  { %v2696_v58 = vpop.eup %2695 }
 0x1f2   :  { %2046 = vst [vmem:[#allocation10 + $0x8] sm:$0xff] %v2696_v58 }
 0x209   :  { %v1800_v61 = vpop.f32.mrf.mxu0 }
 0x20a   :  { %v1841_v62 = vpop.f32.mrf.mxu1  ;;  %v1801_v63 = vadd.f32 %v1800_v61, %v508_v59 }
 0x20b   :  { %v1802_v0 = vpop.f32.mrf.mxu0 }
 0x20c   :  { %v1843_v1 = vpop.f32.mrf.mxu1  ;;  %v1842_v2 = vadd.f32 %v1841_v62, %v1801_v63  ;;  %v1803_v3 = vadd.f32 %v1802_v0, %v512_v60 }
 0x20d   :  { %v1804_v4 = vpop.f32.mrf.mxu0 }
 0x20e   :  { %v1845_v5 = vpop.f32.mrf.mxu1  ;;  %v2012_v6 = vsub.f32 0.0, %v1842_v2  ;;  %v1844_v7 = vadd.f32 %v1843_v1, %v1803_v3 }
 0x20f   :  { %v1805_v8 = vpop.f32.mrf.mxu0 }
 0x210   :  { %v1846_v9 = vpop.f32.mrf.mxu1  ;;  %v2021_v10 = vmul.f32 1.442695, %v2012_v6  ;;  %v2013_v11 = vsub.f32 0.0, %v1844_v7 }
 0x212   :  { %2697 = vpow2.f32 %v2021_v10  ;;  %v2023_v19 = vmul.f32 1.442695, %v2013_v11 }
 0x214   :  { %2699 = vpow2.f32 %v2023_v19 }
 0x21f   :  { %v2698_v12 = vpop.eup %2697 }
 0x220   :  { %v2033_v22 = vadd.f32 1.0, %v2698_v12 }
 0x221   :  { %v2700_v13 = vpop.eup %2699 }
 0x222   :  { %2701 = vrcp.f32 %v2033_v22  ;;  %v2034_v44 = vadd.f32 1.0, %v2700_v13 }
 0x224   :  { %2703 = vrcp.f32 %v2034_v44 }
 0x22f   :  { %v2702_v14 = vpop.eup %2701 }
 0x230   :  { %2047 = vst [vmem:[#allocation10 + $0x10] sm:$0xff] %v2702_v14 }
 0x231   :  { %v2704_v15 = vpop.eup %2703 }
 0x232   :  { %2048 = vst [vmem:[#allocation10 + $0x18] sm:$0xff] %v2704_v15 }
 0x249   :  { %v1882_v24 = vpop.f32.mrf.mxu0 }
 0x24a   :  { %v1883_v25 = vadd.f32 %v1882_v24, %v516_v20  ;;  %v1923_v26 = vpop.f32.mrf.mxu1 }
 0x24b   :  { %v1884_v27 = vpop.f32.mrf.mxu0 }
 0x24c   :  { %v1924_v28 = vadd.f32 %v1923_v26, %v1883_v25  ;;  %v1885_v29 = vadd.f32 %v1884_v27, %v520_v23  ;;  %v1925_v30 = vpop.f32.mrf.mxu1 }
 0x24d   :  { %v1886_v31 = vpop.f32.mrf.mxu0 }
 0x24e   :  { %v2014_v32 = vsub.f32 0.0, %v1924_v28  ;;  %v1926_v33 = vadd.f32 %v1925_v30, %v1885_v29  ;;  %v1927_v35 = vpop.f32.mrf.mxu1 }
 0x24f   :  { %v1887_v36 = vpop.f32.mrf.mxu0 }
 0x250   :  { %v2025_v37 = vmul.f32 1.442695, %v2014_v32  ;;  %v2015_v38 = vsub.f32 0.0, %v1926_v33  ;;  %v1928_v39 = vpop.f32.mrf.mxu1 }
 0x252   :  { %2705 = vpow2.f32 %v2025_v37  ;;  %v2027_v40 = vmul.f32 1.442695, %v2015_v38 }
 0x254   :  { %2707 = vpow2.f32 %v2027_v40 }
 0x25f   :  { %v2706_v48 = vpop.eup %2705 }
 0x260   :  { %v2035_v42 = vadd.f32 1.0, %v2706_v48 }
 0x261   :  { %v2708_v41 = vpop.eup %2707 }
 0x262   :  { %2709 = vrcp.f32 %v2035_v42  ;;  %v2036_v43 = vadd.f32 1.0, %v2708_v41 }
 0x264   :  { %2711 = vrcp.f32 %v2036_v43 }
 0x269   :  { %v2321_v47 = vpop.f32.mrf.mxu0 }
 0x26a   :  { %v2343_v49 = vpop.f32.mrf.mxu1 }
 0x26b   :  { %v2322_v51 = vpop.f32.mrf.mxu0 }
 0x26c   :  { %v2323_v52 = vadd.f32 %v2322_v51, %v2321_v47  ;;  %v2344_v53 = vpop.f32.mrf.mxu1 }
 0x26d   :  { %v2324_v18 = vpop.f32.mrf.mxu0  ;;  %v2345_v21 = vadd.f32 %v2344_v53, %v2343_v49 }
 0x26e   :  { %v1965_v54 = vadd.f32 %v2323_v52, %v524_v50  ;;  %v2346_v55 = vpop.f32.mrf.mxu1 }
 0x26f   :  { %v2710_v56 = vpop.eup %2709  ;;  %v2325_v57 = vpop.f32.mrf.mxu0 }
 0x270   :  { %2049 = vst [vmem:[#allocation10 + $0x20] sm:$0xff] %v2710_v56  ;;  %v2005_v58 = vadd.f32 %v2345_v21, %v1965_v54  ;;  %v2347_v59 = vpop.f32.mrf.mxu1 }
 0x271   :  { %v2712_v60 = vpop.eup %2711 }
 0x272   :  { %2050 = vst [vmem:[#allocation10 + $0x28] sm:$0xff] %v2712_v60  ;;  %v2016_v61 = vsub.f32 0.0, %v2005_v58 }
 0x274   :  { %v2029_v17 = vmul.f32 1.442695, %v2016_v61 }
 0x276   :  { %2713 = vpow2.f32 %v2029_v17 }
 0x283   :  { %v2714_v62 = vpop.eup %2713 }
 0x284   :  { %v2037_v63 = vadd.f32 1.0, %v2714_v62 }
 0x286   :  { %2715 = vrcp.f32 %v2037_v63 }
 0x293   :  { %v2716_v34 = vpop.eup %2715 }
 0x294   :  { %2051 = vst [vmem:[#allocation10 + $0x30] sm:$0xff] %v2716_v34 }
 0x295   :  { %2808 = shalt.err (!%p2805_p10)
}
 0x296   :  { %2061 = dma.vmem_to_hbm [thread:$0]  %s2059_s15, 896, %s2946_s5, [#allocation4]  }
 0x297   :  { %2823 = dma.done.wait [#allocation4], 896  }
 0x298   :  { %2824 = vsyncadd [#allocation4], 4294966400 }
 0x299   :  { %2065 = vsyncpa [#allocation3], 1 }
 0x29a   :  { %2066 = vsyncpa [#allocation6], 1 }
 0x29b   :  { %2067 = vsyncpa [#allocation9], 1 }
 0x29c   :  { %2068 = vsyncpa [#allocation4], 1 }

</bundles_post_ra>
